<compile_context>
chip_gen: v6e
topology: v6e:2x2x1
jax: 0.10.0
libtpu: 0.0.40
codegen_flags: <defaults>
</compile_context>

<pallas_src>
import functools

import jax
import jax.numpy as jnp
from jax.experimental import pallas as pl
from jax.experimental.pallas import tpu as pltpu

INPUT_DIM = 48    # gym CliffWalking-v0: observation_space.n
OUTPUT_DIM = 4    # gym CliffWalking-v0: action_space.n
HIDDEN1 = 128
HIDDEN2 = 64
HEAD_DIM = 8      # fused head width: cols 0:4 actor, col 4 critic, cols 5:8 zero


def _round_up(n, m):
    return (n + m - 1) // m * m


def actor_critic_kernel(x_ref, w1_ref, b1_ref, w2_ref, b2_ref,
                        wh_ref, bh_ref, out_ref):
    """fc(48->128)+ReLU -> fc(128->64)+ReLU -> fused actor+critic head (64->8)."""
    # TODO(synk): if callers feed one-hot CliffWalking states, this first dot is a
    # row-select of w1; a scalar-prefetched index gather would skip it entirely.
    h1 = jnp.dot(x_ref[...], w1_ref[...], preferred_element_type=jnp.float32)
    h1 = jnp.maximum(h1 + b1_ref[...], 0.0)

    h2 = jnp.dot(h1, w2_ref[...], preferred_element_type=jnp.float32)
    h2 = jnp.maximum(h2 + b2_ref[...], 0.0)

    out_ref[...] = (
        jnp.dot(h2, wh_ref[...], preferred_element_type=jnp.float32) + bh_ref[...]
    ).astype(out_ref.dtype)


def _choose_tile(batch, tile_b, align):
    """Batch tile: multiple of `align`, <= tile_b, >= 2 grid steps for big batches."""
    b_al = _round_up(batch, align)
    tile = _round_up(min(tile_b, b_al), align)
    if b_al >= 1024:
        # v7x megacore: make sure the "parallel" batch axis has >= 2 grid steps so
        # both TensorCores get work; each step stays >= ~512 rows which amortizes
        # the ~0.35 us per-step overhead. Harmless on 1-TC v5e/v6e.
        tile = min(tile, _round_up((b_al + 1) // 2, align))
    return max(tile, align)


@functools.partial(jax.jit, static_argnames=("tile_b", "use_bf16"))
def actor_critic_forward(x, fused_params, *, tile_b=4096, use_bf16=False):
    """x: (B, INPUT_DIM) f32. fused_params from prepare_params().
    Returns (actor_logits (B, OUTPUT_DIM), value (B, 1))."""
    B = x.shape[0]
    w1, b1, w2, b2, wh, bh = fused_params

    if use_bf16:
        # Optional v5e MXU speedup (bf16-native MXU, half the x read traffic).
        # Breaks exact f32 parity (~1e-2 relative error); accumulation stays f32.
        x = x.astype(jnp.bfloat16)
        w1 = w1.astype(jnp.bfloat16)
        w2 = w2.astype(jnp.bfloat16)
        wh = wh.astype(jnp.bfloat16)

    align = 16 if use_bf16 else 8
    tile = _choose_tile(B, tile_b, align)
    b_pad = _round_up(B, tile)
    if b_pad != B:
        x = jnp.pad(x, ((0, b_pad - B), (0, 0)))
    grid = (b_pad // tile,)

    def weight_spec(shape):
        # Full-array block, constant index -> stays resident in VMEM across the
        # grid; single-buffered (no point double-buffering ~100 KB of
        # grid-invariant weights).
        return pl.BlockSpec(shape, lambda i: (0, 0), pipeline_mode=pl.Buffered(1))

    flops = 2 * b_pad * (INPUT_DIM * HIDDEN1 + HIDDEN1 * HIDDEN2 + HIDDEN2 * HEAD_DIM)
    bytes_accessed = 4 * (
        b_pad * INPUT_DIM + b_pad * HEAD_DIM
        + INPUT_DIM * HIDDEN1 + HIDDEN1
        + HIDDEN1 * HIDDEN2 + HIDDEN2
        + HIDDEN2 * HEAD_DIM + HEAD_DIM
    )

    out = pl.pallas_call(
        actor_critic_kernel,
        out_shape=jax.ShapeDtypeStruct((b_pad, HEAD_DIM), jnp.float32),
        grid=grid,
        in_specs=[
            pl.BlockSpec((tile, INPUT_DIM), lambda i: (i, 0)),  # x: tiled over batch
            weight_spec((INPUT_DIM, HIDDEN1)),
            weight_spec((1, HIDDEN1)),
            weight_spec((HIDDEN1, HIDDEN2)),
            weight_spec((1, HIDDEN2)),
            weight_spec((HIDDEN2, HEAD_DIM)),
            weight_spec((1, HEAD_DIM)),
        ],
        # HEAD_DIM (=8) equals the full output width, so the <128-lane block is
        # legal; cuts HBM writeback ~16x vs. a 128-wide padded slab.
        out_specs=pl.BlockSpec((tile, HEAD_DIM), lambda i: (i, 0)),
        compiler_params=pltpu.CompilerParams(
            dimension_semantics=("parallel",),   # shard batch steps across TCs on v7x
            vmem_limit_bytes=32 * 1024 * 1024,   # safe on v7x's 64 MiB physical VMEM
        ),
        cost_estimate=pl.CostEstimate(
            flops=flops, transcendentals=0, bytes_accessed=bytes_accessed),
    )(x, w1, b1, w2, b2, wh, bh)

    # One slice drops batch padding + head zero-padding; then split the two heads.
    head = out[:B, :OUTPUT_DIM + 1]
    return head[:, :OUTPUT_DIM], head[:, OUTPUT_DIM:OUTPUT_DIM + 1]


def prepare_params(params):
    """One-time hoist (outside the per-call hot path): fuse actor (64,4) and
    critic (64,1) into a zero-padded (64, HEAD_DIM) weight / (1, HEAD_DIM) bias."""
    w1, b1, w2, b2, wa, ba, wc, bc = params
    wh = jnp.zeros((HIDDEN2, HEAD_DIM), jnp.float32)
    wh = wh.at[:, :OUTPUT_DIM].set(wa).at[:, OUTPUT_DIM:OUTPUT_DIM + 1].set(wc)
    bh = jnp.zeros((1, HEAD_DIM), jnp.float32)
    bh = bh.at[:, :OUTPUT_DIM].set(ba).at[:, OUTPUT_DIM:OUTPUT_DIM + 1].set(bc)
    return (w1, b1, w2, b2, wh, bh)


def init_params(key):
    """Deterministic init mimicking torch.nn.Linear (U(-1/sqrt(fan_in), +)).
    Weights stored as (in_dim, out_dim); biases as (1, out_dim)."""
    def linear(key, fan_in, fan_out):
        kw, kb = jax.random.split(key)
        bound = 1.0 / jnp.sqrt(float(fan_in))
        w = jax.random.uniform(kw, (fan_in, fan_out), jnp.float32, -bound, bound)
        b = jax.random.uniform(kb, (1, fan_out), jnp.float32, -bound, bound)
        return w, b

    k1, k2, k3, k4 = jax.random.split(key, 4)
    w1, b1 = linear(k1, INPUT_DIM, HIDDEN1)
    w2, b2 = linear(k2, HIDDEN1, HIDDEN2)
    wa, ba = linear(k3, HIDDEN2, OUTPUT_DIM)
    wc, bc = linear(k4, HIDDEN2, 1)
    return (w1, b1, w2, b2, wa, ba, wc, bc)


def reference_forward(x, params):
    w1, b1, w2, b2, wa, ba, wc, bc = params
    h = jnp.maximum(x @ w1 + b1, 0.0)
    h = jnp.maximum(h @ w2 + b2, 0.0)
    return h @ wa + ba, h @ wc + bc


if __name__ == "__main__":
    key = jax.random.PRNGKey(0)
    kx, kp = jax.random.split(key)

    params = init_params(kp)
    fused = prepare_params(params)   # fused-head weights built once, reused below

    # Small batch (RL-inference regime): single tile, single grid step.
    B = 8
    x = jax.random.normal(kx, (B, INPUT_DIM), jnp.float32)
    actor_logits, value = jax.block_until_ready(actor_critic_forward(x, fused))
    ref_actor, ref_value = reference_forward(x, params)
    assert actor_logits.shape == (B, OUTPUT_DIM) and value.shape == (B, 1)
    assert jnp.allclose(actor_logits, ref_actor, atol=1e-5, rtol=1e-5)
    assert jnp.allclose(value, ref_value, atol=1e-5, rtol=1e-5)

    # Batch that needs padding + a 2-step grid (exercises tiling + megacore path).
    B2 = 1000
    x2 = jax.random.normal(jax.random.PRNGKey(1), (B2, INPUT_DIM), jnp.float32)
    a2, v2 = jax.block_until_ready(actor_critic_forward(x2, fused, tile_b=512))
    ra2, rv2 = reference_forward(x2, params)
    assert a2.shape == (B2, OUTPUT_DIM) and v2.shape == (B2, 1)
    assert jnp.allclose(a2, ra2, atol=1e-4, rtol=1e-5)
    assert jnp.allclose(v2, rv2, atol=1e-4, rtol=1e-5)

    # Large batch, default tile: the >=2-step split kicks in (grid=(2,)).
    B3 = 3000
    x3 = jax.random.normal(jax.random.PRNGKey(2), (B3, INPUT_DIM), jnp.float32)
    a3, v3 = jax.block_until_ready(actor_critic_forward(x3, fused))
    ra3, rv3 = reference_forward(x3, params)
    assert a3.shape == (B3, OUTPUT_DIM) and v3.shape == (B3, 1)
    assert jnp.allclose(a3, ra3, atol=1e-4, rtol=1e-5)
    assert jnp.allclose(v3, rv3, atol=1e-4, rtol=1e-5)

    # Optional bf16 MXU path (v5e win); gated off by default, looser tolerance.
    ab, vb = jax.block_until_ready(actor_critic_forward(x, fused, use_bf16=True))
    assert jnp.allclose(ab, ref_actor, atol=1e-1, rtol=1e-1)
    assert jnp.allclose(vb, ref_value, atol=1e-1, rtol=1e-1)

    print("KERNEL_OK")
</pallas_src>

<mosaic_0001>
module attributes {stable_mosaic.version = 11 : i64} {
  func.func @actor_critic_kernel(%arg0: i32, %arg1: memref<8x48xf32, #tpu.memory_space<vmem>>, %arg2: memref<48x128xf32, #tpu.memory_space<vmem>>, %arg3: memref<1x128xf32, #tpu.memory_space<vmem>>, %arg4: memref<128x64xf32, #tpu.memory_space<vmem>>, %arg5: memref<1x64xf32, #tpu.memory_space<vmem>>, %arg6: memref<64x8xf32, #tpu.memory_space<vmem>>, %arg7: memref<1x8xf32, #tpu.memory_space<vmem>>, %arg8: memref<8x8xf32, #tpu.memory_space<vmem>>) attributes {dimension_semantics = [#tpu.dimension_semantics<parallel>], iteration_bounds = array<i64: 1>, scalar_prefetch = 0 : i64, scratch_operands = 0 : i64, tpu.core_type = #tpu.core_type<tc>, window_params = [{transform_indices = @transform_0, window_bounds = array<i64: 8, 48>}, {pipeline_mode = #tpu.pipeline_mode<synchronous>, transform_indices = @transform_1, window_bounds = array<i64: 48, 128>}, {pipeline_mode = #tpu.pipeline_mode<synchronous>, transform_indices = @transform_2, window_bounds = array<i64: 1, 128>}, {pipeline_mode = #tpu.pipeline_mode<synchronous>, transform_indices = @transform_3, window_bounds = array<i64: 128, 64>}, {pipeline_mode = #tpu.pipeline_mode<synchronous>, transform_indices = @transform_4, window_bounds = array<i64: 1, 64>}, {pipeline_mode = #tpu.pipeline_mode<synchronous>, transform_indices = @transform_5, window_bounds = array<i64: 64, 8>}, {pipeline_mode = #tpu.pipeline_mode<synchronous>, transform_indices = @transform_6, window_bounds = array<i64: 1, 8>}, {transform_indices = @transform_7, window_bounds = array<i64: 8, 8>}]} {
    %c0 = arith.constant 0 : index
    %c0_0 = arith.constant 0 : index
    %0 = vector.load %arg1[%c0, %c0_0] : memref<8x48xf32, #tpu.memory_space<vmem>>, vector<8x48xf32>
    %c0_1 = arith.constant 0 : index
    %c0_2 = arith.constant 0 : index
    %1 = vector.load %arg2[%c0_1, %c0_2] : memref<48x128xf32, #tpu.memory_space<vmem>>, vector<48x128xf32>
    %cst = arith.constant dense<0.000000e+00> : vector<8x128xf32>
    %2 = tpu.matmul %0, %1, %cst {dimension_numbers = #tpu.dot_dimension_numbers<[1], [0], [0], [1], [0, 0, 1, 1], [], []>} : vector<8x48xf32>, vector<48x128xf32>, vector<8x128xf32> -> vector<8x128xf32>
    %c0_3 = arith.constant 0 : index
    %c0_4 = arith.constant 0 : index
    %3 = vector.load %arg3[%c0_3, %c0_4] : memref<1x128xf32, #tpu.memory_space<vmem>>, vector<1x128xf32>
    %4 = vector.broadcast %3 : vector<1x128xf32> to vector<8x128xf32>
    %5 = arith.addf %2, %4 : vector<8x128xf32>
    %cst_5 = arith.constant 0.000000e+00 : f32
    %6 = vector.broadcast %cst_5 : f32 to vector<8x128xf32>
    %7 = arith.maximumf %5, %6 : vector<8x128xf32>
    %c0_6 = arith.constant 0 : index
    %c0_7 = arith.constant 0 : index
    %8 = vector.load %arg4[%c0_6, %c0_7] : memref<128x64xf32, #tpu.memory_space<vmem>>, vector<128x64xf32>
    %cst_8 = arith.constant dense<0.000000e+00> : vector<8x64xf32>
    %9 = tpu.matmul %7, %8, %cst_8 {dimension_numbers = #tpu.dot_dimension_numbers<[1], [0], [0], [1], [0, 0, 1, 1], [], []>} : vector<8x128xf32>, vector<128x64xf32>, vector<8x64xf32> -> vector<8x64xf32>
    %c0_9 = arith.constant 0 : index
    %c0_10 = arith.constant 0 : index
    %10 = vector.load %arg5[%c0_9, %c0_10] : memref<1x64xf32, #tpu.memory_space<vmem>>, vector<1x64xf32>
    %11 = vector.broadcast %10 : vector<1x64xf32> to vector<8x64xf32>
    %12 = arith.addf %9, %11 : vector<8x64xf32>
    %cst_11 = arith.constant 0.000000e+00 : f32
    %13 = vector.broadcast %cst_11 : f32 to vector<8x64xf32>
    %14 = arith.maximumf %12, %13 : vector<8x64xf32>
    %c0_12 = arith.constant 0 : index
    %c0_13 = arith.constant 0 : index
    %15 = vector.load %arg6[%c0_12, %c0_13] : memref<64x8xf32, #tpu.memory_space<vmem>>, vector<64x8xf32>
    %cst_14 = arith.constant dense<0.000000e+00> : vector<8x8xf32>
    %16 = tpu.matmul %14, %15, %cst_14 {dimension_numbers = #tpu.dot_dimension_numbers<[1], [0], [0], [1], [0, 0, 1, 1], [], []>} : vector<8x64xf32>, vector<64x8xf32>, vector<8x8xf32> -> vector<8x8xf32>
    %c0_15 = arith.constant 0 : index
    %c0_16 = arith.constant 0 : index
    %17 = vector.load %arg7[%c0_15, %c0_16] : memref<1x8xf32, #tpu.memory_space<vmem>>, vector<1x8xf32>
    %18 = vector.broadcast %17 : vector<1x8xf32> to vector<8x8xf32>
    %19 = arith.addf %16, %18 : vector<8x8xf32>
    %c0_17 = arith.constant 0 : index
    %c0_18 = arith.constant 0 : index
    %20 = vector.load %arg8[%c0_17, %c0_18] : memref<8x8xf32, #tpu.memory_space<vmem>>, vector<8x8xf32>
    tpu.vector_store %arg8[%c0_17, %c0_18], %19 {strides = array<i32>} : memref<8x8xf32, #tpu.memory_space<vmem>>, vector<8x8xf32>,
    return
  }
  func.func @transform_0(%arg0: i32) -> (i32, i32) {
    %c0_i32 = arith.constant 0 : i32
    %c0_i32_0 = arith.constant 0 : i32
    return %arg0, %c0_i32 : i32, i32
  }
  func.func @transform_1(%arg0: i32) -> (i32, i32) {
    %c0_i32 = arith.constant 0 : i32
    %c0_i32_0 = arith.constant 0 : i32
    %c0_i32_1 = arith.constant 0 : i32
    return %c0_i32, %c0_i32_0 : i32, i32
  }
  func.func @transform_2(%arg0: i32) -> (i32, i32) {
    %c0_i32 = arith.constant 0 : i32
    %c0_i32_0 = arith.constant 0 : i32
    %c0_i32_1 = arith.constant 0 : i32
    return %c0_i32, %c0_i32_0 : i32, i32
  }
  func.func @transform_3(%arg0: i32) -> (i32, i32) {
    %c0_i32 = arith.constant 0 : i32
    %c0_i32_0 = arith.constant 0 : i32
    %c0_i32_1 = arith.constant 0 : i32
    return %c0_i32, %c0_i32_0 : i32, i32
  }
  func.func @transform_4(%arg0: i32) -> (i32, i32) {
    %c0_i32 = arith.constant 0 : i32
    %c0_i32_0 = arith.constant 0 : i32
    %c0_i32_1 = arith.constant 0 : i32
    return %c0_i32, %c0_i32_0 : i32, i32
  }
  func.func @transform_5(%arg0: i32) -> (i32, i32) {
    %c0_i32 = arith.constant 0 : i32
    %c0_i32_0 = arith.constant 0 : i32
    %c0_i32_1 = arith.constant 0 : i32
    return %c0_i32, %c0_i32_0 : i32, i32
  }
  func.func @transform_6(%arg0: i32) -> (i32, i32) {
    %c0_i32 = arith.constant 0 : i32
    %c0_i32_0 = arith.constant 0 : i32
    %c0_i32_1 = arith.constant 0 : i32
    return %c0_i32, %c0_i32_0 : i32, i32
  }
  func.func @transform_7(%arg0: i32) -> (i32, i32) {
    %c0_i32 = arith.constant 0 : i32
    %c0_i32_0 = arith.constant 0 : i32
    return %arg0, %c0_i32 : i32, i32
  }
}

</mosaic_0001>

<bundles_post_ra>
// kernel: actor_critic_forward.1
= control target key start
LH: loop header
LB: loop body
LE: loop exit
PB: predicated region body
PF: predicated region fallthrough
CT: control target
= control target key end

     0   :  { %v413_v0 = vmov 0.0   ;;  %vm414_vm0 = vmmov 0   ;;  %vm40_vm1 = vcmask 392192   ;;  %vm224_vm2 = vcmask 523264   ;;  %s596_s1 = inlined_call_operand.vmem [shape: f32[48,128], index: 1, kind: input, shape index: {}]   ;;  %s597_s3 = inlined_call_operand.vmem [shape: f32[128,64], index: 3, kind: input, shape index: {}]   ;;  %s598_s0 = inlined_call_operand.vmem [shape: f32[8,48], index: 0, kind: input, shape index: {}]   ;;  %s599_s5 = inlined_call_operand.vmem [shape: f32[64,8], index: 5, kind: input, shape index: {}]   ;;  %s600_s2 = inlined_call_operand.vmem [shape: f32[1,128], index: 2, kind: input, shape index: {}]   ;;  %s601_s4 = inlined_call_operand.vmem [shape: f32[1,64], index: 4, kind: input, shape index: {}]   ;;  %s602_s6 = inlined_call_operand.vmem [shape: f32[1,8], index: 6, kind: input, shape index: {}]   ;;  %s603_s7 = inlined_call_operand.vmem [shape: f32[8,8], index: 7, kind: output, shape index: {}]  }
   0x1   :  { %342 = vmatprep.subr.mxu0 %v413_v0  ;;  %v32_v1 = vld [vmem:[%s596_s1 + $0x28] sm:$0xff]  ;;  %v31_v2 = vld [vmem:[%s596_s1 + $0x20] sm:$0xff]  ;;  %354 = vmatprep.mubr.msk.f32.mxu0 %vm414_vm0, %v413_v0  ;;  %v30_v3 = vld [vmem:[%s596_s1 + $0x18] sm:$0xff]  ;;  %vm298_vm3 = vcmask 64512  }
   0x2   :  { %343 = vmatpush3.msra.mxu0 %v32_v1  ;;  %357 = vmatprep.subr.mxu1 %v413_v0  ;;  %v130_v4 = vld [vmem:[%s597_s3 + $0x78] sm:$0xff]  ;;  %v129_v5 = vld [vmem:[%s597_s3 + $0x70] sm:$0xff]  ;;  %v128_v7 = vld [vmem:[%s597_s3 + $0x68] sm:$0xff] }
   0x3   :  { %344 = vmatprep.subr.mxu0 %v413_v0  ;;  %389 = vmatprep.mubr.msk.f32.mxu1 %vm414_vm0, %v413_v0  ;;  %v29_v6 = vld [vmem:[%s596_s1 + $0x10] sm:$0xff]  ;;  %v28_v8 = vld [vmem:[%s596_s1 + $0x8] sm:$0xff]  ;;  %v127_v9 = vld [vmem:[%s597_s3 + $0x60] sm:$0xff] }
   0x4   :  { %345 = vmatpush3.msra.mxu0 %v31_v2  ;;  %358 = vmatpush3.msra.mxu1 %v130_v4  ;;  %v27_v10 = vld [vmem:[%s596_s1] sm:$0xff]  ;;  %v126_v11 = vld [vmem:[%s597_s3 + $0x58] sm:$0xff]  ;;  %v125_v13 = vld [vmem:[%s597_s3 + $0x50] sm:$0xff] }
   0x5   :  { %346 = vmatprep.subr.mxu0 %v413_v0  ;;  %359 = vmatprep.subr.mxu1 %v413_v0  ;;  %v26_v12 = vld [vmem:[%s598_s0] sm:$0xff]  ;;  %v124_v14 = vld [vmem:[%s597_s3 + $0x48] sm:$0xff]  ;;  %v122_v16 = vld [vmem:[%s597_s3 + $0x38] sm:$0xff] }
   0x6   :  { %347 = vmatpush3.msra.mxu0 %v30_v3  ;;  %360 = vmatpush3.msra.mxu1 %v129_v5  ;;  %v123_v15 = vld [vmem:[%s597_s3 + $0x40] sm:$0xff]  ;;  %v121_v17 = vld [vmem:[%s597_s3 + $0x30] sm:$0xff]  ;;  %v120_v18 = vld [vmem:[%s597_s3 + $0x28] sm:$0xff] }
   0x7   :  { %348 = vmatprep.subr.mxu0 %v413_v0  ;;  %361 = vmatprep.subr.mxu1 %v413_v0  ;;  %v119_v19 = vld [vmem:[%s597_s3 + $0x20] sm:$0xff]  ;;  %v118_v20 = vld [vmem:[%s597_s3 + $0x18] sm:$0xff]  ;;  %v117_v21 = vld [vmem:[%s597_s3 + $0x10] sm:$0xff] }
   0x8   :  { %349 = vmatpush3.msra.mxu0 %v29_v6  ;;  %362 = vmatpush3.msra.mxu1 %v128_v7  ;;  %v116_v22 = vld [vmem:[%s597_s3 + $0x8] sm:$0xff]  ;;  %v115_v23 = vld [vmem:[%s597_s3] sm:$0xff]  ;;  %v216_v24 = vld [vmem:[%s599_s5 + $0x38] sm:$0xff] }
   0x9   :  { %350 = vmatprep.subr.mxu0 %v413_v0  ;;  %363 = vmatprep.subr.mxu1 %v413_v0  ;;  %v215_v25 = vld [vmem:[%s599_s5 + $0x30] sm:$0xff]  ;;  %v214_v26 = vld [vmem:[%s599_s5 + $0x28] sm:$0xff]  ;;  %v213_v27 = vld [vmem:[%s599_s5 + $0x20] sm:$0xff] }
   0xa   :  { %351 = vmatpush3.msra.mxu0 %v28_v8  ;;  %364 = vmatpush3.msra.mxu1 %v127_v9  ;;  %v212_v28 = vld [vmem:[%s599_s5 + $0x18] sm:$0xff]  ;;  %v304_v29 = vld [vmem:[%s600_s2] ss:$0 sm:$0xff]  ;;  %v211_v34 = vld [vmem:[%s599_s5 + $0x10] sm:$0xff] }
   0xb   :  { %352 = vmatprep.subr.mxu0 %v413_v0  ;;  %365 = vmatprep.subr.mxu1 %v413_v0  ;;  %v210_v35 = vld [vmem:[%s599_s5 + $0x8] sm:$0xff]  ;;  %v209_v36 = vld [vmem:[%s599_s5] sm:$0xff] }
   0xc   :  { %353 = vmatpush3.msra.mxu0 %v27_v10  ;;  %366 = vmatpush3.msra.mxu1 %v126_v11  ;;  %v306_v37 = vld [vmem:[%s601_s4] ss:$0 sm:$0xff] }
   0xd   :  { %355 = vmatmul.mubr.msk.f32.vlgmr.msra.gmra.mxu0 %vm40_vm1, %v26_v12  ;;  %367 = vmatprep.subr.mxu1 %v413_v0  ;;  %v307_v42 = vld [vmem:[%s602_s6] ss:$0 sm:$0xff] }
   0xe   :  { %368 = vmatpush3.msra.mxu1 %v125_v13  ;;  %392 = vmatprep.subr.mxu0 %v413_v0 }
   0xf   :  { %369 = vmatprep.subr.mxu1 %v413_v0  ;;  %408 = vmatprep.mubr.msk.f32.mxu0 %vm414_vm0, %v413_v0 }
  0x10   :  { %370 = vmatpush3.msra.mxu1 %v124_v14  ;;  %393 = vmatpush3.msra.mxu0 %v216_v24 }
  0x11   :  { %371 = vmatprep.subr.mxu1 %v413_v0  ;;  %394 = vmatprep.subr.mxu0 %v413_v0 }
  0x12   :  { %372 = vmatpush3.msra.mxu1 %v123_v15  ;;  %395 = vmatpush3.msra.mxu0 %v215_v25 }
  0x13   :  { %373 = vmatprep.subr.mxu1 %v413_v0  ;;  %396 = vmatprep.subr.mxu0 %v413_v0 }
  0x14   :  { %374 = vmatpush3.msra.mxu1 %v122_v16  ;;  %397 = vmatpush3.msra.mxu0 %v214_v26 }
  0x15   :  { %375 = vmatprep.subr.mxu1 %v413_v0  ;;  %398 = vmatprep.subr.mxu0 %v413_v0 }
  0x16   :  { %376 = vmatpush3.msra.mxu1 %v121_v17  ;;  %399 = vmatpush3.msra.mxu0 %v213_v27 }
  0x17   :  { %377 = vmatprep.subr.mxu1 %v413_v0  ;;  %400 = vmatprep.subr.mxu0 %v413_v0 }
  0x18   :  { %378 = vmatpush3.msra.mxu1 %v120_v18  ;;  %401 = vmatpush3.msra.mxu0 %v212_v28 }
  0x19   :  { %379 = vmatprep.subr.mxu1 %v413_v0  ;;  %402 = vmatprep.subr.mxu0 %v413_v0 }
  0x1a   :  { %380 = vmatpush3.msra.mxu1 %v119_v19  ;;  %403 = vmatpush3.msra.mxu0 %v211_v34 }
  0x1b   :  { %381 = vmatprep.subr.mxu1 %v413_v0  ;;  %404 = vmatprep.subr.mxu0 %v413_v0 }
  0x1c   :  { %382 = vmatpush3.msra.mxu1 %v118_v20  ;;  %405 = vmatpush3.msra.mxu0 %v210_v35 }
  0x1d   :  { %383 = vmatprep.subr.mxu1 %v413_v0  ;;  %406 = vmatprep.subr.mxu0 %v413_v0 }
  0x1e   :  { %384 = vmatpush3.msra.mxu1 %v117_v21  ;;  %407 = vmatpush3.msra.mxu0 %v209_v36 }
  0x1f   :  { %385 = vmatprep.subr.mxu1 %v413_v0 }
  0x20   :  { %386 = vmatpush3.msra.mxu1 %v116_v22 }
  0x21   :  { %387 = vmatprep.subr.mxu1 %v413_v0 }
  0x22   :  { %388 = vmatpush3.msra.mxu1 %v115_v23 }
  0xcd   :  { %v110_v30 = vpop.f32.mrf.mxu0 }
  0xce   :  { %v111_v31 = vadd.f32 %v304_v29, %v110_v30 }
  0xcf   :  { %v356_v32 = vpop.f32.mrf.mxu0 }
  0xd0   :  { %v114_v33 = vmax.f32 %v111_v31, 0.0 }
  0xd2   :  { %390 = vmatmul.mubr.f32.vlgmr.msra.gmra.mxu1 %v114_v33 }
 0x192   :  { %v204_v38 = vpop.f32.mrf.mxu1 }
 0x193   :  { %v205_v39 = vadd.f32 %v306_v37, %v204_v38 }
 0x194   :  { %v391_v40 = vpop.f32.mrf.mxu1 }
 0x195   :  { %v208_v41 = vmax.f32 %v205_v39, 0.0 }
 0x197   :  { %409 = vmatmul.mubr.msk.f32.vlgmr.msra.gmra.mxu0 %vm224_vm2, %v208_v41 }
 0x257   :  { %v294_v43 = vpop.f32.mrf.mxu0 }
 0x258   :  { %v295_v44 = vadd.f32 %v307_v42, %v294_v43 }
 0x259   :  { %v410_v45 = vpop.f32.mrf.mxu0 }
 0x25a   :  { %299 = vst.msk [vmem:[%s603_s7] sm:$0xff] %vm298_vm3, %v295_v44 }

</bundles_post_ra>
